<compile_context>
chip_gen: v5e
topology: v5e:2x2
jax: 0.10.0
libtpu: 0.0.40
codegen_flags: <defaults>
</compile_context>

<pallas_src>
import jax
import jax.numpy as jnp
from jax.experimental import pallas as pl
from jax.experimental.pallas import tpu as pltpu

BN_EPS = 1e-5


def _stats_kernel(x_ref, w_ref, sum_ref, sumsq_ref):
    # x_ref: [1, C_in, N_tile], w_ref: [C_out, C_in]
    # sum_ref / sumsq_ref: [C_out, 1] resident accumulators (constant output block index).
    @pl.when(jnp.logical_and(pl.program_id(0) == 0, pl.program_id(1) == 0))
    def _():
        sum_ref[...] = jnp.zeros_like(sum_ref)
        sumsq_ref[...] = jnp.zeros_like(sumsq_ref)

    y = jnp.dot(w_ref[...], x_ref[0], preferred_element_type=jnp.float32)  # [C_out, N_tile]
    # Cross-lane reductions go to the XLU (different slot than the MXU push above).
    sum_ref[...] += jnp.sum(y, axis=1, keepdims=True)
    sumsq_ref[...] += jnp.sum(y * y, axis=1, keepdims=True)


def _norm_kernel(x_ref, ws_ref, shift_ref, o_ref):
    # x_ref: [1, C_in, N_tile], ws_ref: [C_out, C_in] (BN scale pre-folded into W),
    # shift_ref: [C_out, 1], o_ref: [1, C_out, N_tile] -- lane-dense output store.
    y = jnp.dot(ws_ref[...], x_ref[0], preferred_element_type=jnp.float32)  # [C_out, N_tile]
    out = y + shift_ref[...]                     # per-channel shift, broadcast over lanes
    o_ref[0] = jnp.maximum(out, 0.0).astype(o_ref.dtype)


def _pick_n_tile(n, cap=2048):
    # Biggest lane-dense tile that divides N (bigger tiles amortize the ~0.35us/step overhead;
    # VMEM footprint per step stays tiny for typical C_in/C_out).
    for cand in (4096, 2048, 1024, 512, 256, 128):
        if cand <= cap and n % cand == 0:
            return cand
    return n  # fall back to the full row (block dim == array dim is always legal)


def fcbnrelu1d(x, weight, bias, gamma, beta, *, eps=BN_EPS, n_tile=None):
    """x: [B, C_in, N] float32. weight: [C_out, C_in, 1]. Returns [B, C_out, N].

    Conv1d(kernel_size=1, bias=True) + BatchNorm1d (training-mode batch stats,
    biased variance) + ReLU. The conv bias is exactly cancelled by the BN mean
    subtraction, so it is not used inside the kernels (results are identical).
    """
    del bias  # cancelled by training-mode BatchNorm mean subtraction
    B, C_in, N = x.shape
    C_out = weight.shape[0]
    nt = n_tile if n_tile is not None else _pick_n_tile(N)
    assert N % nt == 0, "N_tile must divide N"
    T = N // nt

    x = x.astype(jnp.float32)
    w2d = weight[:, :, 0].astype(jnp.float32)  # [C_out, C_in]  (tiny, no big-tensor transpose)

    # ---- pass 1: per-channel sum / sum-of-squares of y = W @ x -------------------
    ch_sum, ch_sumsq = pl.pallas_call(
        _stats_kernel,
        out_shape=(jax.ShapeDtypeStruct((C_out, 1), jnp.float32),
                   jax.ShapeDtypeStruct((C_out, 1), jnp.float32)),
        grid=(B, T),
        in_specs=[
            pl.BlockSpec((1, C_in, nt), lambda b, t: (b, 0, t)),
            pl.BlockSpec((C_out, C_in), lambda b, t: (0, 0)),
        ],
        out_specs=(
            pl.BlockSpec((C_out, 1), lambda b, t: (0, 0)),
            pl.BlockSpec((C_out, 1), lambda b, t: (0, 0)),
        ),
        compiler_params=pltpu.CompilerParams(
            dimension_semantics=("arbitrary", "arbitrary")),
    )(x, w2d)

    # ---- fold BN into one per-channel scale/shift (tiny [C_out]-sized math) ------
    m = float(B * N)
    mean = ch_sum / m                              # [C_out, 1]
    var = ch_sumsq / m - mean * mean               # biased variance (training-mode BN)
    inv_std = jax.lax.rsqrt(var + eps)
    scale = gamma.reshape(C_out, 1).astype(jnp.float32) * inv_std
    shift = beta.reshape(C_out, 1).astype(jnp.float32) - mean * scale
    w_scaled = w2d * scale                         # fold BN scale into the conv weight

    # ---- pass 2: recompute y per tile with folded weight, + shift + ReLU, NCW out -
    out = pl.pallas_call(
        _norm_kernel,
        out_shape=jax.ShapeDtypeStruct((B, C_out, N), jnp.float32),
        grid=(B, T),
        in_specs=[
            pl.BlockSpec((1, C_in, nt), lambda b, t: (b, 0, t)),
            pl.BlockSpec((C_out, C_in), lambda b, t: (0, 0)),
            pl.BlockSpec((C_out, 1), lambda b, t: (0, 0)),
        ],
        out_specs=pl.BlockSpec((1, C_out, nt), lambda b, t: (b, 0, t)),
        compiler_params=pltpu.CompilerParams(
            dimension_semantics=("parallel", "parallel")),
    )(x, w_scaled, shift)

    return out


def _reference(x, weight, bias, gamma, beta, eps=BN_EPS):
    # Pure-JAX reference matching the PyTorch module (training-mode BN, biased variance).
    y = jnp.einsum("bin,oi->bon", x, weight[:, :, 0]) + bias[None, :, None]
    mean = jnp.mean(y, axis=(0, 2), keepdims=True)
    var = jnp.mean((y - mean) ** 2, axis=(0, 2), keepdims=True)
    yn = (y - mean) * jax.lax.rsqrt(var + eps)
    return jnp.maximum(yn * gamma[None, :, None] + beta[None, :, None], 0.0)


if __name__ == "__main__":
    B, C_in, C_out, N = 2, 16, 32, 512

    key = jax.random.PRNGKey(0)
    kx, kw, kb, kg, kbe = jax.random.split(key, 5)

    x = jax.random.normal(kx, (B, C_in, N), dtype=jnp.float32)

    # Synthetic parameters (shapes per nn.Conv1d / nn.BatchNorm1d).
    fan_in = C_in * 1
    bound = 1.0 / (fan_in ** 0.5)
    weight = jax.random.uniform(kw, (C_out, C_in, 1), jnp.float32, -bound, bound)
    bias = jax.random.uniform(kb, (C_out,), jnp.float32, -bound, bound)
    gamma = jax.random.uniform(kg, (C_out,), jnp.float32, 0.5, 1.5)   # BN weight
    beta = 0.1 * jax.random.normal(kbe, (C_out,), dtype=jnp.float32)  # BN bias

    # n_tile=256 -> grid (B, N//256) = (2, 2): exercises tiled accumulation + pipelining.
    out = fcbnrelu1d(x, weight, bias, gamma, beta, n_tile=256)
    out = jax.block_until_ready(out)

    ref = _reference(x, weight, bias, gamma, beta)
    assert out.shape == (B, C_out, N)
    assert jnp.allclose(out, ref, atol=1e-4, rtol=1e-4), "mismatch vs reference"

    print("KERNEL_OK")
</pallas_src>

<mosaic_0001>
module attributes {stable_mosaic.version = 11 : i64} {
  func.func @_stats_kernel(%arg0: i32, %arg1: i32, %arg2: memref<1x16x256xf32, #tpu.memory_space<vmem>>, %arg3: memref<32x16xf32, #tpu.memory_space<vmem>>, %arg4: memref<32x1xf32, #tpu.memory_space<vmem>>, %arg5: memref<32x1xf32, #tpu.memory_space<vmem>>) attributes {dimension_semantics = [#tpu.dimension_semantics<arbitrary>, #tpu.dimension_semantics<arbitrary>], iteration_bounds = array<i64: 2, 2>, scalar_prefetch = 0 : i64, scratch_operands = 0 : i64, tpu.core_type = #tpu.core_type<tc>, window_params = [{transform_indices = @transform_0, window_bounds = array<i64: 1, 16, 256>}, {pipeline_mode = #tpu.pipeline_mode<synchronous>, transform_indices = @transform_1, window_bounds = array<i64: 32, 16>}, {pipeline_mode = #tpu.pipeline_mode<synchronous>, transform_indices = @transform_2, window_bounds = array<i64: 32, 1>}, {pipeline_mode = #tpu.pipeline_mode<synchronous>, transform_indices = @transform_3, window_bounds = array<i64: 32, 1>}]} {
    %c0_i32 = arith.constant 0 : i32
    %0 = arith.cmpi eq, %arg0, %c0_i32 : i32
    %c0_i32_0 = arith.constant 0 : i32
    %1 = arith.cmpi eq, %arg1, %c0_i32_0 : i32
    %2 = arith.andi %0, %1 : i1
    %3 = arith.extui %2 : i1 to i32
    %c0_i32_1 = arith.constant 0 : i32
    %4 = arith.cmpi ne, %3, %c0_i32_1 : i32
    scf.if %4 {
      %cst_16 = arith.constant 0.000000e+00 : f32
      %20 = vector.broadcast %cst_16 : f32 to vector<32x1xf32>
      %c0_17 = arith.constant 0 : index
      %c0_18 = arith.constant 0 : index
      %21 = vector.load %arg4[%c0_17, %c0_18] : memref<32x1xf32, #tpu.memory_space<vmem>>, vector<32x1xf32>
      tpu.vector_store %arg4[%c0_17, %c0_18], %20 {strides = array<i32>} : memref<32x1xf32, #tpu.memory_space<vmem>>, vector<32x1xf32>,
      %cst_19 = arith.constant 0.000000e+00 : f32
      %22 = vector.broadcast %cst_19 : f32 to vector<32x1xf32>
      %c0_20 = arith.constant 0 : index
      %c0_21 = arith.constant 0 : index
      %23 = vector.load %arg5[%c0_20, %c0_21] : memref<32x1xf32, #tpu.memory_space<vmem>>, vector<32x1xf32>
      tpu.vector_store %arg5[%c0_20, %c0_21], %22 {strides = array<i32>} : memref<32x1xf32, #tpu.memory_space<vmem>>, vector<32x1xf32>,
    } else {
    }
    %c0 = arith.constant 0 : index
    %c0_2 = arith.constant 0 : index
    %5 = vector.load %arg3[%c0, %c0_2] : memref<32x16xf32, #tpu.memory_space<vmem>>, vector<32x16xf32>
    %c0_3 = arith.constant 0 : index
    %c0_4 = arith.constant 0 : index
    %c0_5 = arith.constant 0 : index
    %6 = vector.load %arg2[%c0_3, %c0_4, %c0_5] : memref<1x16x256xf32, #tpu.memory_space<vmem>>, vector<1x16x256xf32>
    %7 = vector.shape_cast %6 : vector<1x16x256xf32> to vector<16x256xf32>
    %cst = arith.constant dense<0.000000e+00> : vector<32x256xf32>
    %8 = tpu.matmul %5, %7, %cst {dimension_numbers = #tpu.dot_dimension_numbers<[1], [0], [0], [1], [0, 0, 1, 1], [], []>} : vector<32x16xf32>, vector<16x256xf32>, vector<32x256xf32> -> vector<32x256xf32>
    %c0_6 = arith.constant 0 : index
    %c0_7 = arith.constant 0 : index
    %9 = vector.load %arg4[%c0_6, %c0_7] : memref<32x1xf32, #tpu.memory_space<vmem>>, vector<32x1xf32>
    %cst_8 = arith.constant dense<0.000000e+00> : vector<32xf32>
    %10 = vector.multi_reduction <add>, %8, %cst_8 [1] : vector<32x256xf32> to vector<32xf32>
    %11 = vector.shape_cast %10 : vector<32xf32> to vector<32x1xf32>
    %12 = arith.addf %9, %11 : vector<32x1xf32>
    %c0_9 = arith.constant 0 : index
    %c0_10 = arith.constant 0 : index
    %13 = vector.load %arg4[%c0_9, %c0_10] : memref<32x1xf32, #tpu.memory_space<vmem>>, vector<32x1xf32>
    tpu.vector_store %arg4[%c0_9, %c0_10], %12 {strides = array<i32>} : memref<32x1xf32, #tpu.memory_space<vmem>>, vector<32x1xf32>,
    %c0_11 = arith.constant 0 : index
    %c0_12 = arith.constant 0 : index
    %14 = vector.load %arg5[%c0_11, %c0_12] : memref<32x1xf32, #tpu.memory_space<vmem>>, vector<32x1xf32>
    %15 = arith.mulf %8, %8 : vector<32x256xf32>
    %cst_13 = arith.constant dense<0.000000e+00> : vector<32xf32>
    %16 = vector.multi_reduction <add>, %15, %cst_13 [1] : vector<32x256xf32> to vector<32xf32>
    %17 = vector.shape_cast %16 : vector<32xf32> to vector<32x1xf32>
    %18 = arith.addf %14, %17 : vector<32x1xf32>
    %c0_14 = arith.constant 0 : index
    %c0_15 = arith.constant 0 : index
    %19 = vector.load %arg5[%c0_14, %c0_15] : memref<32x1xf32, #tpu.memory_space<vmem>>, vector<32x1xf32>
    tpu.vector_store %arg5[%c0_14, %c0_15], %18 {strides = array<i32>} : memref<32x1xf32, #tpu.memory_space<vmem>>, vector<32x1xf32>,
    return
  }
  func.func @transform_0(%arg0: i32, %arg1: i32) -> (i32, i32, i32) {
    %c0_i32 = arith.constant 0 : i32
    %c0_i32_0 = arith.constant 0 : i32
    return %arg0, %c0_i32, %arg1 : i32, i32, i32
  }
  func.func @transform_1(%arg0: i32, %arg1: i32) -> (i32, i32) {
    %c0_i32 = arith.constant 0 : i32
    %c0_i32_0 = arith.constant 0 : i32
    %c0_i32_1 = arith.constant 0 : i32
    return %c0_i32, %c0_i32_0 : i32, i32
  }
  func.func @transform_2(%arg0: i32, %arg1: i32) -> (i32, i32) {
    %c0_i32 = arith.constant 0 : i32
    %c0_i32_0 = arith.constant 0 : i32
    %c0_i32_1 = arith.constant 0 : i32
    return %c0_i32, %c0_i32_0 : i32, i32
  }
  func.func @transform_3(%arg0: i32, %arg1: i32) -> (i32, i32) {
    %c0_i32 = arith.constant 0 : i32
    %c0_i32_0 = arith.constant 0 : i32
    %c0_i32_1 = arith.constant 0 : i32
    return %c0_i32, %c0_i32_0 : i32, i32
  }
}

</mosaic_0001>

<bundles_post_ra>
// kernel: tpu_custom_call.1
= control target key start
LH: loop header
LB: loop body
LE: loop exit
PB: predicated region body
PF: predicated region fallthrough
CT: control target
= control target key end

     0   :  { %9 = vsyncpa [#allocation3], 0  ;;  %s826_s0 = inlined_call_operand.hbm [shape: f32[2,16,512], index: 0, kind: input, shape index: {}]   ;;  %s827_s1 = inlined_call_operand.vmem [shape: f32[32,16], index: 1, kind: input, shape index: {}]   ;;  %s828_s2 = inlined_call_operand.vmem [shape: f32[32,1], index: 2, kind: output, shape index: {0}]   ;;  %s829_s3 = inlined_call_operand.vmem [shape: f32[32,1], index: 3, kind: output, shape index: {1}]  }
   0x1   :  { %11 = vsyncpa [#allocation3 + $0x1], 0  ;;  %s624_s12 = smov 0   ;;  %s626_s13 = smov 0  }
   0x2   :  { %s628_s14 = smov 0   ;;  %s630_s15 = smov 0  }
   0x3   :  { %s632_s16 = smov 0   ;;  %s634_s17 = smov 0  }
   0x4   :  { %s636_s18 = smov 0   ;;  %s638_s19 = smov 0  }
   0x5 LB: > { %s404_s20 = sadd.s32 4294967295, %s598_s19   ;;  %s26_s21 = sadd.s32 1, %s590_s17  ;;  %s598_s19 = sphi %s638_s19, %s17_s19   ;;  %s594_s18 = sphi %s636_s18, %s841_s18   ;;  %s590_s17 = sphi %s634_s17, %s840_s17   ;;  %s586_s16 = sphi %s632_s16, %s839_s16   ;;  %s582_s15 = sphi %s630_s15, %s838_s15   ;;  %s578_s14 = sphi %s628_s14, %s837_s14   ;;  %s574_s13 = sphi %s626_s13, %s836_s13   ;;  %s570_s12 = sphi %s624_s12, %s835_s12  }
   0x6   : > { %p27_p0 = scmp.ge.s32.totalorder %s26_s21, 2  ;;  %s29_s22 = sadd.s32 1, %s594_s18 }
   0x7   : > { %s38_s23 = sadd.s32 1, %s578_s14  ;;  %p45_p1 = scmp.ne.s32.totalorder %s578_s14, %s574_s13 }
   0x8   : > { %s843_s21 = smov (%p27_p0, %s26_s21), 0  ;;  %s845_s22 = smov (!%p27_p0, %s29_s22), %s594_s18 }
   0x9   : > { %s34_s24 = ssub.s32 %s590_s17, %s843_s21  ;;  %p46_p2 = scmp.eq.s32.totalorder %s598_s19, 0 }
   0xa   : > { %p31_p3 = scmp.ge.s32.totalorder %s845_s22, 2  ;;  %p51_p4 = scmp.ne.s32.totalorder %s574_s13, %s570_s12 }
   0xb   : > { %p675_p5 = por %p46_p2, %p45_p1  ;;  %p52_p6 = scmp.eq.s32.totalorder %s404_s20, 0 }
   0xc   : > { %s847_s22 = smov (%p31_p3, %s845_s22), 0  ;;  %p433_p8 = scmp.lt.s32.totalorder %s598_s19, 4 }
   0xd   : > { %832 = sst [smem:[#allocation5_spill]] %s847_s22  ;;  %p681_p7 = por %p52_p6, %p51_p4 }
   0xe   : > { %s33_s27 = ssub.s32 %s594_s18, %s847_s22  ;;  %s141_s29 = sand.u32 1, %s578_s14  }
   0xf   : > { %s35_s28 = sor.u32 %s34_s24, %s33_s27  ;;  %s407_s30 = sshll.u32 %s141_s29, 5 }
  0x10   : > { %p36_p9 = scmp.eq.s32.totalorder %s35_s28, 0  ;;  %s408_s4 = sshll.u32 %s590_s17, 1 }
  0x11   : > { %s409_s6 = sshll.u32 %s594_s18, 3  ;;  %s145_s8 = scalar_lea.vmem [#allocation2], %s407_s30 }
  0x12   : > { %s691_s5 = scalar_select %p36_p9, %s578_s14, %s38_s23  }
  0x13   : > { %s150_s7 = sadd.s32 %s409_s6, %s408_s4  ;;  %s155_s9 = sshll.u32 %s145_s8, 4  ;;  %s156_s9 = int_to_ptr.vmem [resolvable:$true] %s155_s9 }
  0x14   : > { %s410_s10 = sshll.u32 %s150_s7, 3  ;;  %p430_p10 = pnand %p433_p8, %p675_p5 }
  0x15   : > { %s152_s20 = scalar_lea.hbm %s826_s0, %s410_s10  ;;  %s142_s27 = scalar_lea.sflag [#allocation3], %s141_s29 }
  0x16   : > { %s153_s24 = sshll.u32 %s152_s20, 4  ;;  %s600_s23 = smov 512   ;;  %s154_s24 = int_to_ptr.hbm [resolvable:$true] %s153_s24 }
  0x17   : > { %s601_s28 = smov 256   ;;  %s602_s22 = smov 16  }
  0x18   : > { %432 = dma.hbm_to_vmem [thread:$0]  (!%p430_p10), %s154_s24, 512, %s156_s9, %s142_s27, %s600_s23, %s601_s28, %s602_s22  }
  0x19   : > { %p411_p11 = scmp.ge.s32.totalorder %s598_s19, 1  ;;  %p163_p12 = scmp.lt.s32.totalorder %s598_s19, 5 }
  0x1b   : > { %p164_p13 = pnand %p411_p11, %p163_p12 }
  0x1c   : > { %s169_s30 = sand.u32 (!%p164_p13), 1, %s574_s13  }
  0x1d   : > { %167 = sbr.rel (%p164_p13) target bundleno = 328 (0x148), region = 28  ;;  %s412_s4 = sshll.u32 (!%p164_p13), %s169_s30, 5 }
  0x1e   : > { %s170_s6 = scalar_lea.sflag (!%p164_p13), [#allocation3], %s169_s30  ;;  %s173_s7 = scalar_lea.vmem (!%p164_p13), [#allocation2], %s412_s4 }
  0x22   : > { %565 = dma.done.wait (%p681_p7), %s170_s6, 512  }
  0x23   : > { %567 = vsyncadd (%p681_p7), %s170_s6, 4294966784  ;;  %p193_p0 = scmp.eq.s32.totalorder %s586_s16, 0  ;;  %p194_p1 = scmp.eq.s32.totalorder %s582_s15, 0 }
  0x25   : > { %p195_p2 = pnand %p194_p1, %p193_p0 }
  0x27   : > { %198 = sbr.rel (%p195_p2) target bundleno = 53 (0x35), region = 36 }
  0x2c   : > { %vm199_vm0 = vcmask 7168   ;;  %v603_v0 = vmov 0.0  }
  0x2d   : > { %200 = vst.msk [vmem:[%s828_s2] sm:$0xff] %vm199_vm0, %v603_v0 }
  0x2e   : > { %201 = vst.msk [vmem:[%s828_s2 + $0x8] sm:$0xff] %vm199_vm0, %v603_v0 }
  0x2f   : > { %202 = vst.msk [vmem:[%s828_s2 + $0x10] sm:$0xff] %vm199_vm0, %v603_v0 }
  0x30   : > { %203 = vst.msk [vmem:[%s828_s2 + $0x18] sm:$0xff] %vm199_vm0, %v603_v0 }
  0x31   : > { %204 = vst.msk [vmem:[%s829_s3] sm:$0xff] %vm199_vm0, %v603_v0 }
  0x32   : > { %205 = vst.msk [vmem:[%s829_s3 + $0x8] sm:$0xff] %vm199_vm0, %v603_v0 }
  0x33   : > { %206 = vst.msk [vmem:[%s829_s3 + $0x10] sm:$0xff] %vm199_vm0, %v603_v0 }
  0x34   : > { %207 = vst.msk [vmem:[%s829_s3 + $0x18] sm:$0xff] %vm199_vm0, %v603_v0 }
  0x35 PF: > { %v214_v1 = vld [vmem:[%s173_s7 + $0x10] sm:$0xff]  ;;  %v215_v2 = vld [vmem:[%s173_s7 + $0x18] sm:$0xff]  ;;  %v212_v3 = vld [vmem:[%s173_s7] sm:$0xff]  ;;  %vm216_vm1 = vcmask 130048   ;;  %vm307_vm2 = vcmask 7168  }
  0x36   : > { %243 = vmatpush.msra.mxu0 %v214_v1  ;;  %423 = vmatpush.msra.mxu2 %v214_v1  ;;  %v213_v4 = vld [vmem:[%s173_s7 + $0x8] sm:$0xff]  ;;  %v208_v5 = vld [vmem:[%s827_s1] sm:$0xff]  ;;  %v210_v6 = vld [vmem:[%s827_s1 + $0x10] sm:$0xff] }
  0x37   : > { %272 = vmatpush.msra.mxu1 %v215_v2  ;;  %425 = vmatpush.msra.mxu3 %v215_v2  ;;  %v209_v7 = vld [vmem:[%s827_s1 + $0x8] sm:$0xff]  ;;  %v211_v8 = vld [vmem:[%s827_s1 + $0x18] sm:$0xff]  ;;  %v287_v33 = vld [vmem:[%s828_s2] sm:$0xff] }
  0x38   : > { %244 = vmatpush.msra.mxu0 %v212_v3  ;;  %424 = vmatpush.msra.mxu2 %v212_v3  ;;  %v312_v35 = vld [vmem:[%s829_s3] sm:$0xff]  ;;  %v289_v39 = vld [vmem:[%s828_s2 + $0x10] sm:$0xff]  ;;  %v288_v41 = vld [vmem:[%s828_s2 + $0x8] sm:$0xff] }
  0x39   : > { %273 = vmatpush.msra.mxu1 %v213_v4  ;;  %426 = vmatpush.msra.mxu3 %v213_v4  ;;  %v313_v44 = vld [vmem:[%s829_s3 + $0x8] sm:$0xff]  ;;  %v290_v48 = vld [vmem:[%s828_s2 + $0x18] sm:$0xff] }
  0x3a   : > { %413 = vmatmul.msk.f32.vlgmr.msra.gmra.mxu0 %vm216_vm1, %v208_v5  ;;  %415 = vmatmul.msk.f32.vlgmr.msra.gmra.mxu2 %vm216_vm1, %v210_v6  ;;  %v314_v50 = vld [vmem:[%s829_s3 + $0x10] sm:$0xff] }
  0x3b   : > { %417 = vmatmul.msk.f32.vlgmr.msra.gmra.mxu1 %vm216_vm1, %v208_v5  ;;  %419 = vmatmul.msk.f32.vlgmr.msra.gmra.mxu3 %vm216_vm1, %v210_v6  ;;  %v315_v54 = vld [vmem:[%s829_s3 + $0x18] sm:$0xff] }
  0x42   : > { %414 = vmatmul.msk.f32.gmra.mxu0 %vm216_vm1, %v209_v7  ;;  %416 = vmatmul.msk.f32.gmra.mxu2 %vm216_vm1, %v211_v8 }
  0x43   : > { %418 = vmatmul.msk.f32.gmra.mxu1 %vm216_vm1, %v209_v7  ;;  %420 = vmatmul.msk.f32.gmra.mxu3 %vm216_vm1, %v211_v8 }
  0xb7   : > { %v246_v9 = vpop.f32.mrf.mxu0 }
  0xb8   : > { %v316_v10 = vmul.f32 %v246_v9, %v246_v9  ;;  %v275_v11 = vpop.f32.mrf.mxu1 }
  0xb9   : > { %v317_v12 = vmul.f32 %v275_v11, %v275_v11  ;;  %v291_v13 = vadd.f32 %v275_v11, %v246_v9 }
  0xbb   : > { %292 = vadd.xlane.f32.xlu0 %v291_v13  ;;  %v324_v14 = vadd.f32 %v317_v12, %v316_v10 }
  0xbd   : > { %v252_v15 = vpop.f32.mrf.mxu2  ;;  %325 = vadd.xlane.f32.xlu2 %v324_v14 }
  0xbe   : > { %v281_v16 = vpop.f32.mrf.mxu3  ;;  %v320_v24 = vmul.f32 %v252_v15, %v252_v15 }
  0xbf   : > { %v249_v17 = vpop.f32.mrf.mxu0  ;;  %v297_v18 = vadd.f32 %v281_v16, %v252_v15  ;;  %v321_v25 = vmul.f32 %v281_v16, %v281_v16 }
  0xc0   : > { %v318_v19 = vmul.f32 %v249_v17, %v249_v17  ;;  %v278_v20 = vpop.f32.mrf.mxu1 }
  0xc1   : > { %v294_v21 = vadd.f32 %v278_v20, %v249_v17  ;;  %v319_v22 = vmul.f32 %v278_v20, %v278_v20  ;;  %298 = vadd.xlane.f32.xlu1 %v297_v18  ;;  %v330_v29 = vadd.f32 %v321_v25, %v320_v24 }
  0xc3   : > { %295 = vadd.xlane.f32.xlu0 %v294_v21  ;;  %v327_v23 = vadd.f32 %v319_v22, %v318_v19 }
  0xc5   : > { %v255_v26 = vpop.f32.mrf.mxu2  ;;  %328 = vadd.xlane.f32.xlu2 %v327_v23 }
  0xc6   : > { %v284_v27 = vpop.f32.mrf.mxu3  ;;  %v322_v30 = vmul.f32 %v255_v26, %v255_v26 }
  0xc7   : > { %v300_v28 = vadd.f32 %v284_v27, %v255_v26  ;;  %v323_v31 = vmul.f32 %v284_v27, %v284_v27 }
  0xc9   : > { %301 = vadd.xlane.f32.xlu1 %v300_v28  ;;  %v333_v32 = vadd.f32 %v323_v31, %v322_v30 }
  0xcb   : > { %331 = vadd.xlane.f32.xlu0 %v330_v29 }
  0xd1   : > { %334 = vadd.xlane.f32.xlu1 %v333_v32 }
 0x12e   : > { %v293_v34 = vpop.xlane.xlu0 %292 }
 0x12f   : > { %v303_v36 = vadd.f32 %v293_v34, %v287_v33 }
 0x130   : > { %v326_v37 = vpop.xlane.xlu2 %325 }
 0x131   : > { %308 = vst.msk [vmem:[%s828_s2] sm:$0xff] %vm307_vm2, %v303_v36  ;;  %v336_v38 = vadd.f32 %v326_v37, %v312_v35 }
 0x133   : > { %340 = vst.msk [vmem:[%s829_s3] sm:$0xff] %vm307_vm2, %v336_v38 }
 0x134   : > { %v299_v40 = vpop.xlane.xlu1 %298 }
 0x135   : > { %v305_v42 = vadd.f32 %v299_v40, %v289_v39 }
 0x136   : > { %v296_v43 = vpop.xlane.xlu0 %295 }
 0x137   : > { %310 = vst.msk [vmem:[%s828_s2 + $0x10] sm:$0xff] %vm307_vm2, %v305_v42  ;;  %v304_v45 = vadd.f32 %v296_v43, %v288_v41 }
 0x138   : > { %v329_v46 = vpop.xlane.xlu2 %328 }
 0x139   : > { %309 = vst.msk [vmem:[%s828_s2 + $0x8] sm:$0xff] %vm307_vm2, %v304_v45  ;;  %v337_v47 = vadd.f32 %v329_v46, %v313_v44 }
 0x13b   : > { %341 = vst.msk [vmem:[%s829_s3 + $0x8] sm:$0xff] %vm307_vm2, %v337_v47 }
 0x13c   : > { %v302_v49 = vpop.xlane.xlu1 %301 }
 0x13d   : > { %v306_v51 = vadd.f32 %v302_v49, %v290_v48 }
 0x13e   : > { %v332_v52 = vpop.xlane.xlu0 %331 }
 0x13f   : > { %311 = vst.msk [vmem:[%s828_s2 + $0x18] sm:$0xff] %vm307_vm2, %v306_v51  ;;  %v338_v53 = vadd.f32 %v332_v52, %v314_v50 }
 0x141   : > { %342 = vst.msk [vmem:[%s829_s3 + $0x10] sm:$0xff] %vm307_vm2, %v338_v53 }
 0x144   : > { %v335_v55 = vpop.xlane.xlu1 %334 }
 0x145   : > { %v339_v56 = vadd.f32 %v335_v55, %v315_v54 }
 0x147   : > { %343 = vst.msk [vmem:[%s829_s3 + $0x18] sm:$0xff] %vm307_vm2, %v339_v56 }
 0x148 PF: > { %s17_s19 = sadd.s32 1, %s598_s19   ;;  %s834_s30 = sld [smem:[#allocation5_spill]] }
 0x149   : > { %p14_p3 = scmp.ge.s32.totalorder %s17_s19, 6   ;;  %s835_s12 = smov %s574_s13 }
 0x14a   : > { %s836_s13 = smov %s578_s14  ;;  %s837_s14 = smov %s691_s5 }
 0x14b   : > { %s838_s15 = smov %s590_s17  ;;  %s839_s16 = smov %s594_s18 }
 0x14c   : > { %s840_s17 = smov %s843_s21  ;;  %16 = sbr.rel (!%p14_p3) target bundleno = 5 (0x5), region = 76 }
 0x14e   : > { %s841_s18 = smov %s834_s30 }
 0x151   :  { %361 = vsyncpa [#allocation3], 1 }
 0x152   :  { %363 = vsyncpa [#allocation3 + $0x1], 1 }

</bundles_post_ra>
